<compile_context>
chip_gen: v7x
topology: tpu7x:2x2x1
jax: 0.10.0
libtpu: 0.0.40
codegen_flags: <defaults>
</compile_context>

<pallas_src>
import functools

import numpy as np
import jax
import jax.numpy as jnp
from jax.experimental import pallas as pl
from jax.experimental.pallas import tpu as pltpu

KERNEL_SIZES = (3, 5, 7, 9, 11)
NUM_BRANCHES = 1 + len(KERNEL_SIZES)
_RADII = tuple(k // 2 for k in KERNEL_SIZES)
assert all(k % 2 == 1 for k in KERNEL_SIZES), "cascade assumes odd pooling kernels"
assert all(_RADII[i] < _RADII[i + 1] for i in range(len(_RADII) - 1))


def _round_up(x, m):
    return (x + m - 1) // m * m


def _spp_kernel(mask_ref, x_ref, o_ref, *, H, W):
    """mask_ref: (4, HW) int32 edge masks [col==0, col==W-1, row==0, row==H-1].
    x_ref: (cb, HW) input tile.  o_ref: (NUM_BRANCHES, cb, HW) output tile."""
    HW = H * W
    m = x_ref[...]

    # Hoist edge masks once (broadcast is not CSE'd if left inside the cascade).
    def edge(i):
        row = mask_ref[pl.ds(i, 1), :]                      # (1, HW) int32
        return jnp.broadcast_to(row, m.shape) != 0          # (cb, HW) bool

    left, right, top, bot = edge(0), edge(1), edge(2), edge(3)

    def nmax_w(v):
        # v[:, i-1] / v[:, i+1] with edge clamping (== -inf padding for a max).
        prv = jnp.where(left, v, pltpu.roll(v, 1, axis=1))
        nxt = jnp.where(right, v, pltpu.roll(v, HW - 1, axis=1))
        return jnp.maximum(v, jnp.maximum(prv, nxt))

    def nmax_h(v):
        # v[:, i-W] / v[:, i+W] with edge clamping.
        up = jnp.where(top, v, pltpu.roll(v, W, axis=1))
        dn = jnp.where(bot, v, pltpu.roll(v, HW - W, axis=1))
        return jnp.maximum(v, jnp.maximum(up, dn))

    o_ref[0] = m                            # identity branch
    r = 0
    for idx, target_r in enumerate(_RADII):
        while r < target_r:                 # one separable 3x3 max-pool per step
            m = nmax_w(m)
            m = nmax_h(m)
            r += 1
        o_ref[idx + 1] = m                  # maxpool_{2*target_r+1}(x)


def _pick_channel_block(N, C, H, W, dtype):
    """Channel block + vmem limit from the REAL (padded, double-buffered) footprint."""
    itemsize = jnp.dtype(dtype).itemsize
    sublane = max(8, 32 // itemsize)                 # 8 for f32, 16 for bf16, 32 for i8
    lane_bytes = _round_up(H * W, 128) * itemsize    # one channel row, lane-padded
    try:
        vmem_cap = int(pltpu.get_tpu_info().vmem_capacity_bytes)
    except Exception:
        vmem_cap = 64 * 1024 * 1024                  # safe for v7x (64 MiB physical)
    budget = (vmem_cap * 6) // 10                    # headroom for compiler scratch

    # Per grid step: 1 input tile + NUM_BRANCHES output tiles, each double-buffered.
    per_chan = 2 * (1 + NUM_BRANCHES) * lane_bytes
    cb = max(1, budget // per_chan)
    cb = min(C, cb)
    if cb < C:
        # BlockSpec: second-to-last block dim must be a multiple of 8 (or the full dim).
        cb = max(8, (cb // 8) * 8)
        if cb >= C:
            cb = C
    # v7x has 2 TensorCores: guarantee >= 2 grid blocks along a parallel axis.
    if N == 1 and cb >= C and C >= 16:
        cb = _round_up(pl.cdiv(C, 2), 8)
        if cb >= C:
            cb = C

    footprint = 2 * (1 + NUM_BRANCHES) * _round_up(cb, sublane) * lane_bytes
    vmem_limit = int(min(vmem_cap, max(footprint + (8 << 20), 32 << 20)))
    return cb, vmem_limit


def spp(x):
    N, C, H, W = x.shape
    HW = H * W
    itemsize = jnp.dtype(x.dtype).itemsize
    cb, vmem_limit = _pick_channel_block(N, C, H, W, x.dtype)
    nc = pl.cdiv(C, cb)                    # partial last block is fine (per-channel op)

    x_flat = x.reshape(N, C, HW)           # lane-dense spatial plane

    # Precomputed boundary masks (built host-side; avoids in-kernel vector div/mod).
    col = np.arange(HW, dtype=np.int64) % W
    row = np.arange(HW, dtype=np.int64) // W
    edge_masks = jnp.asarray(
        np.stack([col == 0, col == W - 1, row == 0, row == H - 1]).astype(np.int32))

    cost = pl.CostEstimate(
        flops=20 * N * C * HW,                                      # 5 stages x 2 axes x 2 maxima
        transcendentals=0,
        bytes_accessed=(1 + NUM_BRANCHES) * N * C * HW * itemsize,  # 1 read + 6 writes
    )

    out = pl.pallas_call(
        functools.partial(_spp_kernel, H=H, W=W),
        out_shape=jax.ShapeDtypeStruct((N, NUM_BRANCHES, C, HW), x.dtype),
        grid=(N, nc),
        in_specs=[
            pl.BlockSpec((4, HW), lambda n, c: (0, 0)),             # edge masks (tiny)
            pl.BlockSpec((None, cb, HW), lambda n, c: (n, c, 0)),   # input tile
        ],
        out_specs=pl.BlockSpec(
            (None, NUM_BRANCHES, cb, HW), lambda n, c: (n, 0, c, 0)),
        compiler_params=pltpu.CompilerParams(
            dimension_semantics=("parallel", "parallel"),
            vmem_limit_bytes=vmem_limit,
        ),
        cost_estimate=cost,
    )(edge_masks, x_flat)

    # (N, 6, C, H*W) -> (N, 6*C, H, W): row-major merge == torch.cat channel layout.
    return out.reshape(N, NUM_BRANCHES * C, H, W)


def spp_reference(x):
    """Pure-JAX reference mirroring nn.MaxPool2d(k, 1, k//2) for each k."""
    init = -jnp.inf if jnp.issubdtype(x.dtype, jnp.floating) else jnp.iinfo(x.dtype).min
    outs = [x]
    for k in KERNEL_SIZES:
        p = k // 2
        outs.append(
            jax.lax.reduce_window(
                x, init, jax.lax.max,
                window_dimensions=(1, 1, k, k),
                window_strides=(1, 1, 1, 1),
                padding=((0, 0), (0, 0), (p, p), (p, p)),
            )
        )
    return jnp.concatenate(outs, axis=1)


if __name__ == "__main__":
    key = jax.random.PRNGKey(0)
    # NCHW, matching the PyTorch module's expected input layout.
    x = jax.random.normal(key, (2, 4, 16, 16), dtype=jnp.float32)

    y = jax.block_until_ready(spp(x))

    y_ref = spp_reference(x)
    assert y.shape == (2, 4 * NUM_BRANCHES, 16, 16), y.shape
    assert jnp.allclose(y, y_ref), "Pallas SPP output mismatch vs reference"

    print("KERNEL_OK")
</pallas_src>

<mosaic_0001>
module attributes {stable_mosaic.version = 11 : i64} {
  func.func @_spp_kernel(%arg0: i32, %arg1: i32, %arg2: memref<4x256xi32, #tpu.memory_space<vmem>>, %arg3: memref<1x4x256xf32, #tpu.memory_space<vmem>>, %arg4: memref<1x6x4x256xf32, #tpu.memory_space<vmem>>) attributes {dimension_semantics = [#tpu.dimension_semantics<parallel>, #tpu.dimension_semantics<parallel>], iteration_bounds = array<i64: 2, 1>, scalar_prefetch = 0 : i64, scratch_operands = 0 : i64, tpu.core_type = #tpu.core_type<tc>, window_params = [{pipeline_mode = #tpu.pipeline_mode<synchronous>, transform_indices = @transform_0, window_bounds = array<i64: 4, 256>}, {transform_indices = @transform_1, window_bounds = array<i64: 1, 4, 256>}, {transform_indices = @transform_2, window_bounds = array<i64: 1, 6, 4, 256>}]} {
    %c0 = arith.constant 0 : index
    %c0_0 = arith.constant 0 : index
    %c0_1 = arith.constant 0 : index
    %0 = vector.load %arg3[%c0, %c0_0, %c0_1] : memref<1x4x256xf32, #tpu.memory_space<vmem>>, vector<1x4x256xf32>
    %1 = vector.shape_cast %0 : vector<1x4x256xf32> to vector<4x256xf32>
    %c0_2 = arith.constant 0 : index
    %c0_3 = arith.constant 0 : index
    %2 = vector.load %arg2[%c0_2, %c0_3] : memref<4x256xi32, #tpu.memory_space<vmem>>, vector<1x256xi32>
    %3 = vector.shape_cast %2 : vector<1x256xi32> to vector<1x256xi32>
    %4 = vector.broadcast %3 : vector<1x256xi32> to vector<4x256xi32>
    %c0_i32 = arith.constant 0 : i32
    %5 = vector.broadcast %c0_i32 : i32 to vector<4x256xi32>
    %6 = arith.cmpi ne, %4, %5 : vector<4x256xi32>
    %c1 = arith.constant 1 : index
    %c0_4 = arith.constant 0 : index
    %7 = vector.load %arg2[%c1, %c0_4] : memref<4x256xi32, #tpu.memory_space<vmem>>, vector<1x256xi32>
    %8 = vector.shape_cast %7 : vector<1x256xi32> to vector<1x256xi32>
    %9 = vector.broadcast %8 : vector<1x256xi32> to vector<4x256xi32>
    %c0_i32_5 = arith.constant 0 : i32
    %10 = vector.broadcast %c0_i32_5 : i32 to vector<4x256xi32>
    %11 = arith.cmpi ne, %9, %10 : vector<4x256xi32>
    %c2 = arith.constant 2 : index
    %c0_6 = arith.constant 0 : index
    %12 = vector.load %arg2[%c2, %c0_6] : memref<4x256xi32, #tpu.memory_space<vmem>>, vector<1x256xi32>
    %13 = vector.shape_cast %12 : vector<1x256xi32> to vector<1x256xi32>
    %14 = vector.broadcast %13 : vector<1x256xi32> to vector<4x256xi32>
    %c0_i32_7 = arith.constant 0 : i32
    %15 = vector.broadcast %c0_i32_7 : i32 to vector<4x256xi32>
    %16 = arith.cmpi ne, %14, %15 : vector<4x256xi32>
    %c3 = arith.constant 3 : index
    %c0_8 = arith.constant 0 : index
    %17 = vector.load %arg2[%c3, %c0_8] : memref<4x256xi32, #tpu.memory_space<vmem>>, vector<1x256xi32>
    %18 = vector.shape_cast %17 : vector<1x256xi32> to vector<1x256xi32>
    %19 = vector.broadcast %18 : vector<1x256xi32> to vector<4x256xi32>
    %c0_i32_9 = arith.constant 0 : i32
    %20 = vector.broadcast %c0_i32_9 : i32 to vector<4x256xi32>
    %21 = arith.cmpi ne, %19, %20 : vector<4x256xi32>
    %c0_10 = arith.constant 0 : index
    %c0_11 = arith.constant 0 : index
    %c0_12 = arith.constant 0 : index
    %c0_13 = arith.constant 0 : index
    %22 = vector.load %arg4[%c0_10, %c0_11, %c0_12, %c0_13] : memref<1x6x4x256xf32, #tpu.memory_space<vmem>>, vector<1x1x4x256xf32>
    %23 = vector.shape_cast %22 : vector<1x1x4x256xf32> to vector<4x256xf32>
    %24 = vector.shape_cast %1 : vector<4x256xf32> to vector<1x1x4x256xf32>
    tpu.vector_store %arg4[%c0_10, %c0_11, %c0_12, %c0_13], %24 {strides = array<i32>} : memref<1x6x4x256xf32, #tpu.memory_space<vmem>>, vector<1x1x4x256xf32>,
    %c1_i32 = arith.constant 1 : i32
    %25 = tpu.dynamic_rotate %1 by %c1_i32 dim 1 : vector<4x256xf32>, i32 -> vector<4x256xf32>
    %26 = arith.select %6, %1, %25 : vector<4x256xi1>, vector<4x256xf32>
    %c255_i32 = arith.constant 255 : i32
    %27 = tpu.dynamic_rotate %1 by %c255_i32 dim 1 : vector<4x256xf32>, i32 -> vector<4x256xf32>
    %28 = arith.select %11, %1, %27 : vector<4x256xi1>, vector<4x256xf32>
    %29 = arith.maximumf %26, %28 : vector<4x256xf32>
    %30 = arith.maximumf %1, %29 : vector<4x256xf32>
    %c16_i32 = arith.constant 16 : i32
    %31 = tpu.dynamic_rotate %30 by %c16_i32 dim 1 : vector<4x256xf32>, i32 -> vector<4x256xf32>
    %32 = arith.select %16, %30, %31 : vector<4x256xi1>, vector<4x256xf32>
    %c240_i32 = arith.constant 240 : i32
    %33 = tpu.dynamic_rotate %30 by %c240_i32 dim 1 : vector<4x256xf32>, i32 -> vector<4x256xf32>
    %34 = arith.select %21, %30, %33 : vector<4x256xi1>, vector<4x256xf32>
    %35 = arith.maximumf %32, %34 : vector<4x256xf32>
    %36 = arith.maximumf %30, %35 : vector<4x256xf32>
    %c0_14 = arith.constant 0 : index
    %c1_15 = arith.constant 1 : index
    %c0_16 = arith.constant 0 : index
    %c0_17 = arith.constant 0 : index
    %37 = vector.load %arg4[%c0_14, %c1_15, %c0_16, %c0_17] : memref<1x6x4x256xf32, #tpu.memory_space<vmem>>, vector<1x1x4x256xf32>
    %38 = vector.shape_cast %37 : vector<1x1x4x256xf32> to vector<4x256xf32>
    %39 = vector.shape_cast %36 : vector<4x256xf32> to vector<1x1x4x256xf32>
    tpu.vector_store %arg4[%c0_14, %c1_15, %c0_16, %c0_17], %39 {strides = array<i32>} : memref<1x6x4x256xf32, #tpu.memory_space<vmem>>, vector<1x1x4x256xf32>,
    %c1_i32_18 = arith.constant 1 : i32
    %40 = tpu.dynamic_rotate %36 by %c1_i32_18 dim 1 : vector<4x256xf32>, i32 -> vector<4x256xf32>
    %41 = arith.select %6, %36, %40 : vector<4x256xi1>, vector<4x256xf32>
    %c255_i32_19 = arith.constant 255 : i32
    %42 = tpu.dynamic_rotate %36 by %c255_i32_19 dim 1 : vector<4x256xf32>, i32 -> vector<4x256xf32>
    %43 = arith.select %11, %36, %42 : vector<4x256xi1>, vector<4x256xf32>
    %44 = arith.maximumf %41, %43 : vector<4x256xf32>
    %45 = arith.maximumf %36, %44 : vector<4x256xf32>
    %c16_i32_20 = arith.constant 16 : i32
    %46 = tpu.dynamic_rotate %45 by %c16_i32_20 dim 1 : vector<4x256xf32>, i32 -> vector<4x256xf32>
    %47 = arith.select %16, %45, %46 : vector<4x256xi1>, vector<4x256xf32>
    %c240_i32_21 = arith.constant 240 : i32
    %48 = tpu.dynamic_rotate %45 by %c240_i32_21 dim 1 : vector<4x256xf32>, i32 -> vector<4x256xf32>
    %49 = arith.select %21, %45, %48 : vector<4x256xi1>, vector<4x256xf32>
    %50 = arith.maximumf %47, %49 : vector<4x256xf32>
    %51 = arith.maximumf %45, %50 : vector<4x256xf32>
    %c0_22 = arith.constant 0 : index
    %c2_23 = arith.constant 2 : index
    %c0_24 = arith.constant 0 : index
    %c0_25 = arith.constant 0 : index
    %52 = vector.load %arg4[%c0_22, %c2_23, %c0_24, %c0_25] : memref<1x6x4x256xf32, #tpu.memory_space<vmem>>, vector<1x1x4x256xf32>
    %53 = vector.shape_cast %52 : vector<1x1x4x256xf32> to vector<4x256xf32>
    %54 = vector.shape_cast %51 : vector<4x256xf32> to vector<1x1x4x256xf32>
    tpu.vector_store %arg4[%c0_22, %c2_23, %c0_24, %c0_25], %54 {strides = array<i32>} : memref<1x6x4x256xf32, #tpu.memory_space<vmem>>, vector<1x1x4x256xf32>,
    %c1_i32_26 = arith.constant 1 : i32
    %55 = tpu.dynamic_rotate %51 by %c1_i32_26 dim 1 : vector<4x256xf32>, i32 -> vector<4x256xf32>
    %56 = arith.select %6, %51, %55 : vector<4x256xi1>, vector<4x256xf32>
    %c255_i32_27 = arith.constant 255 : i32
    %57 = tpu.dynamic_rotate %51 by %c255_i32_27 dim 1 : vector<4x256xf32>, i32 -> vector<4x256xf32>
    %58 = arith.select %11, %51, %57 : vector<4x256xi1>, vector<4x256xf32>
    %59 = arith.maximumf %56, %58 : vector<4x256xf32>
    %60 = arith.maximumf %51, %59 : vector<4x256xf32>
    %c16_i32_28 = arith.constant 16 : i32
    %61 = tpu.dynamic_rotate %60 by %c16_i32_28 dim 1 : vector<4x256xf32>, i32 -> vector<4x256xf32>
    %62 = arith.select %16, %60, %61 : vector<4x256xi1>, vector<4x256xf32>
    %c240_i32_29 = arith.constant 240 : i32
    %63 = tpu.dynamic_rotate %60 by %c240_i32_29 dim 1 : vector<4x256xf32>, i32 -> vector<4x256xf32>
    %64 = arith.select %21, %60, %63 : vector<4x256xi1>, vector<4x256xf32>
    %65 = arith.maximumf %62, %64 : vector<4x256xf32>
    %66 = arith.maximumf %60, %65 : vector<4x256xf32>
    %c0_30 = arith.constant 0 : index
    %c3_31 = arith.constant 3 : index
    %c0_32 = arith.constant 0 : index
    %c0_33 = arith.constant 0 : index
    %67 = vector.load %arg4[%c0_30, %c3_31, %c0_32, %c0_33] : memref<1x6x4x256xf32, #tpu.memory_space<vmem>>, vector<1x1x4x256xf32>
    %68 = vector.shape_cast %67 : vector<1x1x4x256xf32> to vector<4x256xf32>
    %69 = vector.shape_cast %66 : vector<4x256xf32> to vector<1x1x4x256xf32>
    tpu.vector_store %arg4[%c0_30, %c3_31, %c0_32, %c0_33], %69 {strides = array<i32>} : memref<1x6x4x256xf32, #tpu.memory_space<vmem>>, vector<1x1x4x256xf32>,
    %c1_i32_34 = arith.constant 1 : i32
    %70 = tpu.dynamic_rotate %66 by %c1_i32_34 dim 1 : vector<4x256xf32>, i32 -> vector<4x256xf32>
    %71 = arith.select %6, %66, %70 : vector<4x256xi1>, vector<4x256xf32>
    %c255_i32_35 = arith.constant 255 : i32
    %72 = tpu.dynamic_rotate %66 by %c255_i32_35 dim 1 : vector<4x256xf32>, i32 -> vector<4x256xf32>
    %73 = arith.select %11, %66, %72 : vector<4x256xi1>, vector<4x256xf32>
    %74 = arith.maximumf %71, %73 : vector<4x256xf32>
    %75 = arith.maximumf %66, %74 : vector<4x256xf32>
    %c16_i32_36 = arith.constant 16 : i32
    %76 = tpu.dynamic_rotate %75 by %c16_i32_36 dim 1 : vector<4x256xf32>, i32 -> vector<4x256xf32>
    %77 = arith.select %16, %75, %76 : vector<4x256xi1>, vector<4x256xf32>
    %c240_i32_37 = arith.constant 240 : i32
    %78 = tpu.dynamic_rotate %75 by %c240_i32_37 dim 1 : vector<4x256xf32>, i32 -> vector<4x256xf32>
    %79 = arith.select %21, %75, %78 : vector<4x256xi1>, vector<4x256xf32>
    %80 = arith.maximumf %77, %79 : vector<4x256xf32>
    %81 = arith.maximumf %75, %80 : vector<4x256xf32>
    %c0_38 = arith.constant 0 : index
    %c4 = arith.constant 4 : index
    %c0_39 = arith.constant 0 : index
    %c0_40 = arith.constant 0 : index
    %82 = vector.load %arg4[%c0_38, %c4, %c0_39, %c0_40] : memref<1x6x4x256xf32, #tpu.memory_space<vmem>>, vector<1x1x4x256xf32>
    %83 = vector.shape_cast %82 : vector<1x1x4x256xf32> to vector<4x256xf32>
    %84 = vector.shape_cast %81 : vector<4x256xf32> to vector<1x1x4x256xf32>
    tpu.vector_store %arg4[%c0_38, %c4, %c0_39, %c0_40], %84 {strides = array<i32>} : memref<1x6x4x256xf32, #tpu.memory_space<vmem>>, vector<1x1x4x256xf32>,
    %c1_i32_41 = arith.constant 1 : i32
    %85 = tpu.dynamic_rotate %81 by %c1_i32_41 dim 1 : vector<4x256xf32>, i32 -> vector<4x256xf32>
    %86 = arith.select %6, %81, %85 : vector<4x256xi1>, vector<4x256xf32>
    %c255_i32_42 = arith.constant 255 : i32
    %87 = tpu.dynamic_rotate %81 by %c255_i32_42 dim 1 : vector<4x256xf32>, i32 -> vector<4x256xf32>
    %88 = arith.select %11, %81, %87 : vector<4x256xi1>, vector<4x256xf32>
    %89 = arith.maximumf %86, %88 : vector<4x256xf32>
    %90 = arith.maximumf %81, %89 : vector<4x256xf32>
    %c16_i32_43 = arith.constant 16 : i32
    %91 = tpu.dynamic_rotate %90 by %c16_i32_43 dim 1 : vector<4x256xf32>, i32 -> vector<4x256xf32>
    %92 = arith.select %16, %90, %91 : vector<4x256xi1>, vector<4x256xf32>
    %c240_i32_44 = arith.constant 240 : i32
    %93 = tpu.dynamic_rotate %90 by %c240_i32_44 dim 1 : vector<4x256xf32>, i32 -> vector<4x256xf32>
    %94 = arith.select %21, %90, %93 : vector<4x256xi1>, vector<4x256xf32>
    %95 = arith.maximumf %92, %94 : vector<4x256xf32>
    %96 = arith.maximumf %90, %95 : vector<4x256xf32>
    %c0_45 = arith.constant 0 : index
    %c5 = arith.constant 5 : index
    %c0_46 = arith.constant 0 : index
    %c0_47 = arith.constant 0 : index
    %97 = vector.load %arg4[%c0_45, %c5, %c0_46, %c0_47] : memref<1x6x4x256xf32, #tpu.memory_space<vmem>>, vector<1x1x4x256xf32>
    %98 = vector.shape_cast %97 : vector<1x1x4x256xf32> to vector<4x256xf32>
    %99 = vector.shape_cast %96 : vector<4x256xf32> to vector<1x1x4x256xf32>
    tpu.vector_store %arg4[%c0_45, %c5, %c0_46, %c0_47], %99 {strides = array<i32>} : memref<1x6x4x256xf32, #tpu.memory_space<vmem>>, vector<1x1x4x256xf32>,
    return
  }
  func.func @transform_0(%arg0: i32, %arg1: i32) -> (i32, i32) {
    %c0_i32 = arith.constant 0 : i32
    %c0_i32_0 = arith.constant 0 : i32
    %c0_i32_1 = arith.constant 0 : i32
    return %c0_i32, %c0_i32_0 : i32, i32
  }
  func.func @transform_1(%arg0: i32, %arg1: i32) -> (i32, i32, i32) {
    %c0_i32 = arith.constant 0 : i32
    %c0_i32_0 = arith.constant 0 : i32
    return %arg0, %arg1, %c0_i32 : i32, i32, i32
  }
  func.func @transform_2(%arg0: i32, %arg1: i32) -> (i32, i32, i32, i32) {
    %c0_i32 = arith.constant 0 : i32
    %c0_i32_0 = arith.constant 0 : i32
    %c0_i32_1 = arith.constant 0 : i32
    return %arg0, %c0_i32, %arg1, %c0_i32_0 : i32, i32, i32, i32
  }
}

</mosaic_0001>

<bundles_post_ra>
// kernel: tpu_custom_call.1
= control target key start
LH: loop header
LB: loop body
LE: loop exit
PB: predicated region body
PF: predicated region fallthrough
CT: control target
= control target key end

     0   :  { %7 = vsyncpa [#allocation3], 0  ;;  %s1369_s0 = inlined_call_operand.hbm [shape: s32[4,256], index: 0, kind: input, shape index: {}]   ;;  %s1370_s1 = inlined_call_operand.hbm [shape: f32[2,4,256], index: 1, kind: input, shape index: {}]   ;;  %s1371_s2 = inlined_call_operand.hbm [shape: f32[2,6,4,256], index: 2, kind: output, shape index: {}]  }
   0x1   :  { %8 = vsyncpa [#allocation6], 0 }
   0x2   :  { %10 = vsyncpa [#allocation6 + $0x1], 0 }
   0x3   :  { %11 = vsyncpa [#allocation4], 0 }
   0x4   :  { %13 = vsyncpa [#allocation4 + $0x1], 0  ;;  %s903_s9 = smov 0   ;;  %s905_s10 = smov 0  }
   0x5   :  { %s907_s11 = smov 0   ;;  %s909_s12 = smov 0  }
   0x6   :  { %s911_s13 = smov 0   ;;  %s913_s14 = smov 0  }
   0x7 LB: > { %s631_s15 = sadd.s32 4294967295, %s877_s14   ;;  %s632_s16 = sadd.s32 4294967294, %s877_s14   ;;  %s877_s14 = sphi %s913_s14, %s19_s14   ;;  %s873_s13 = sphi %s911_s13, %s1412_s13   ;;  %s869_s12 = sphi %s909_s12, %s1411_s12   ;;  %s865_s11 = sphi %s907_s11, %s1410_s11   ;;  %s861_s10 = sphi %s905_s10, %s1409_s10   ;;  %s857_s9 = sphi %s903_s9, %s1408_s9  }
   0x8   : > { %p74_p0 = scmp.ne.s32.totalorder %s861_s10, %s857_s9  ;;  %p937_p1 = scmp.eq.s32.totalorder %s631_s15, 0 }
   0x9   : > { %p941_p2 = scmp.eq.s32.totalorder %s631_s15, 1  ;;  %p106_p3 = scmp.eq.s32.totalorder %s632_s16, 1 }
   0xa   : > { %s1376_s17 = scalar_select %p937_p1, 1, 0 }
   0xb   : > { %s1377_s18 = scalar_select %p941_p2, 1, 0 }
   0xc   : > { %p947_p4 = por %p937_p1, %p74_p0  ;;  %p633_p5 = scmp.ge.s32.totalorder %s877_s14, 1 }
   0xd   : > { %p952_p6 = por %p106_p3, %p74_p0  ;;  %p113_p7 = scmp.lt.s32.totalorder %s877_s14, 3 }
   0xe   : > { %s1378_s19 = scalar_select %p947_p4, 1, 0 }
   0xf   : > { %s1379_s20 = scalar_select %p952_p6, 1, 0 }
  0x10   : > { %p957_p8 = pnand %p633_p5, %p113_p7  ;;  %s879_s22 = smov [#allocation2]  }
  0x11   : > { %s126_s23 = sshll.u32 %s879_s22, 4  ;;  %s31_s25 = sadd.s32 1, %s873_s13  ;;  %s127_s23 = int_to_ptr.vmem [resolvable:$true] %s126_s23 }
  0x12   : > { %s1380_s21 = scalar_select %p957_p8, 1, 0 }
  0x13   : > { %p661_p10 = pneg %p957_p8  ;;  %s61_s26 = sadd.s32 1, %s865_s11 }
  0x14   : > { %p972_p12 = scmp.ge.s32.totalorder %s31_s25, 2  ;;  %s733_s30 = scalar_lea.hbm %s1369_s0, 128 }
  0x15   : > { %p966_p11 = pnand %p661_p10, %p937_p1  ;;  %p734_p13 = scmp.ne.s32.totalorder %s1369_s0, %s733_s30 }
  0x16   : > { %s1382_s27 = scalar_select %p972_p12, 1, 0 }
  0x17   : > { %p735_p0 = pneg %p966_p11  ;;  %p740_p7 = scmp.lt.u32.totalorder %s733_s30, %s1369_s0 }
  0x19   : > { %p736_p3 = pnand %p735_p0, %p734_p13 }
  0x1b   : > { %p737_p5 = pneg %p736_p3 }
  0x1d   : > { %p742_p10 = pnand %p740_p7, %p737_p5 }
  0x1f   : > { %745 = shalt.err (!%p742_p10)
}
  0x20   : > { %s746_s7 = scalar_lea.vmem %s127_s23, 128  ;;  %p754_p1 = scmp.lt.s32.totalorder %s127_s23, %s127_s23 }
  0x21   : > { %p747_p9 = scmp.ne.s32.totalorder %s127_s23, %s746_s7  ;;  %p755_p8 = scmp.lt.s32.totalorder %s746_s7, %s746_s7 }
  0x23   : > { %p749_p6 = pnand %p747_p9, %p735_p0  ;;  %p756_p2 = por %p755_p8, %p754_p1 }
  0x25   : > { %p750_p4 = pneg %p749_p6 }
  0x27   : > { %p757_p12 = pnand %p756_p2, %p750_p4 }
  0x29   : > { %760 = shalt.err (!%p757_p12)
}
  0x2a   : > { %664 = dma.hbm_to_vmem [thread:$0]  (!%p966_p11), %s1369_s0, 128, %s127_s23, [#allocation3]  }
  0x2b   : > { %p1383_p1 = scmp.ne.s32.totalorder %s1382_s27, 0  ;;  %p68_p2 = scmp.ne.s32.totalorder %s865_s11, %s861_s10 }
  0x2c   : > { %p69_p4 = scmp.eq.s32.totalorder %s877_s14, 0  ;;  %p674_p6 = scmp.lt.s32.totalorder %s877_s14, 2 }
  0x2d   : > { %s1414_s25 = smov (%p1383_p1, %s31_s25), 0  ;;  %p1384_p12 = scmp.ne.s32.totalorder %s1377_s18, 0 }
  0x2e   : > { %s56_s16 = ssub.s32 %s873_s13, %s1414_s25  ;;  %p70_p9 = por %p69_p4, %p68_p2 }
  0x2f   : > { %p59_p8 = scmp.eq.s32.totalorder %s56_s16, 0  ;;  %p1004_p13 = por %p1384_p12, %p68_p2 }
  0x30   : > { %s137_s24 = sand.u32 1, %s865_s11   ;;  %s650_s27 = sshll.u32 %s873_s13, 7 }
  0x31   : > { %s1012_s28 = scalar_select %p59_p8, %s865_s11, %s61_s26  }
  0x32   : > { %s636_s23 = sshll.u32 %s137_s24, 3  ;;  %s1018_s3 = scalar_lea.hbm %s1370_s1, %s650_s27 }
  0x33   : > { %s141_s18 = scalar_lea.vmem [#allocation5], %s636_s23  ;;  %p1022_p11 = pnand %p674_p6, %p70_p9 }
  0x34   : > { %s151_s4 = sshll.u32 %s141_s18, 4  ;;  %s138_s26 = scalar_lea.sflag [#allocation6], %s137_s24  ;;  %s1020_s4 = int_to_ptr.vmem [resolvable:$true] %s151_s4 }
  0x35   : > { %s761_s6 = scalar_lea.hbm %s1018_s3, 128  ;;  %p763_p3 = pneg %p1022_p11 }
  0x36   : > { %p762_p0 = scmp.ne.s32.totalorder %s1018_s3, %s761_s6  ;;  %s766_s15 = scalar_lea.hbm %s1370_s1, 256 }
  0x37   : > { %p767_p10 = scmp.lt.u32.totalorder %s1018_s3, %s1370_s1  ;;  %p768_p1 = scmp.lt.u32.totalorder %s766_s15, %s761_s6 }
  0x38   : > { %p764_p5 = pnand %p763_p3, %p762_p0  ;;  %p770_p4 = scmp.lt.u32.totalorder %s761_s6, %s1018_s3 }
  0x39   : > { %p769_p2 = por %p768_p1, %p767_p10 }
  0x3a   : > { %p765_p7 = pneg %p764_p5 }
  0x3b   : > { %p771_p6 = por %p770_p4, %p769_p2 }
  0x3d   : > { %p772_p8 = pnand %p771_p6, %p765_p7 }
  0x3f   : > { %775 = shalt.err (!%p772_p8)
}
  0x40   : > { %s776_s24 = scalar_lea.vmem %s1020_s4, 128  ;;  %s880_s27 = smov [#allocation5]  }
  0x41   : > { %p777_p9 = scmp.ne.s32.totalorder %s1020_s4, %s776_s24  ;;  %s781_s29 = sshll.u32 %s880_s27, 4  ;;  %s782_s29 = int_to_ptr.vmem [resolvable:$false] %s781_s29 }
  0x42   : > { %s783_s30 = scalar_lea.vmem %s782_s29, 256  ;;  %p784_p5 = scmp.lt.s32.totalorder %s1020_s4, %s782_s29 }
  0x43   : > { %p779_p12 = pnand %p777_p9, %p763_p3  ;;  %p785_p10 = scmp.lt.s32.totalorder %s783_s30, %s776_s24 }
  0x45   : > { %p780_p0 = pneg %p779_p12  ;;  %p786_p1 = por %p785_p10, %p784_p5 }
  0x47   : > { %p787_p2 = pnand %p786_p1, %p780_p0 }
  0x49   : > { %790 = shalt.err (!%p787_p2)
}
  0x4a   : > { %668 = dma.hbm_to_vmem [thread:$0]  (!%p1022_p11), %s1018_s3, 128, %s1020_s4, %s138_s26  }
  0x4b   : > { %p1387_p7 = scmp.ne.s32.totalorder %s1380_s21, 0 }
  0x4c   : > { %p1388_p3 = scmp.ne.s32.totalorder (!%p1387_p7), %s1376_s17, 0 }
  0x4d   : > { %160 = sbr.rel (%p1387_p7) target bundleno = 1394 (0x572), region = 28 }
  0x54   : > { %844 = dma.done.wait (%p1388_p3), [#allocation3], 128  }
  0x55   : > { %846 = vsyncadd (%p1388_p3), [#allocation3], 4294967168  ;;  %s1058_s18 = sand.u32 1, %s861_s10   ;;  %p1389_p4 = scmp.ne.s32.totalorder %s1378_s19, 0 }
  0x56   : > { %s641_s6 = sshll.u32 %s1058_s18, 3  ;;  %s167_s5 = scalar_lea.sflag [#allocation6], %s1058_s18 }
  0x57   : > { %s170_s7 = scalar_lea.vmem [#allocation5], %s641_s6 }
  0x58   : > { %848 = dma.done.wait (%p1389_p4), %s167_s5, 128  }
  0x59   : > { %850 = vsyncadd (%p1389_p4), %s167_s5, 4294967168  ;;  %s651_s21 = smul.u32 48, %s1058_s18  ;;  %v191_v0 = vld [vmem:[%s170_s7] sm:$0xff]  ;;  %s881_s3 = smov 127   ;;  %v193_v2 = vlaneseq }
  0x5a   : > { %254 = vrot.lane.b32.xlu1 %v191_v0, %s881_s3  ;;  %s882_s4 = smov 1   ;;  %v241_v1 = vcombine.high %v191_v0, %v191_v0  ;;  %v204_v6 = vld [vmem:[#allocation2 + $0x1] ss:$4 sm:$0x3]  ;;  %s883_s19 = smov 16  }
  0x5b   : > { %s1068_s17 = scalar_lea.vmem [#allocation7], %s651_s21  ;;  %243 = vrot.lane.b32.xlu0 %v191_v0, %s882_s4  ;;  %v194_v3 = vshrl.u32 %v193_v2, 7  ;;  %v192_v7 = vld [vmem:[#allocation2] ss:$4 sm:$0x3]  ;;  %v1074_v8 = vand.u32 127, %v193_v2 }
  0x5c   : > { %239 = vst [vmem:[%s1068_s17] sm:$0xff] %v191_v0  ;;  %s884_s26 = smov 112   ;;  %v216_v34 = vld [vmem:[#allocation2 + $0x2] ss:$4 sm:$0x3]  ;;  %s652_s8 = smul.u32 768, %s869_s12 }
  0x5d   : > { %v195_v4 = vsub.s32 0, %v194_v3  ;;  %v199_v5 = vsub.s32 1, %v194_v3  ;;  %vm258_vm0 = vcmp.lt.s32.totalorder %v1074_v8, 127  ;;  %vm249_vm1 = vcmp.lt.s32.totalorder %v1074_v8, 1  ;;  %s532_s15 = sshll.u32 %s1068_s17, 4  ;;  %s517_s27 = scalar_lea.sflag [#allocation4], %s1058_s18  ;;  %s1319_s15 = int_to_ptr.vmem [resolvable:$true] %s532_s15 }
  0x5e   : > { %256 = vrot.lane.b32.xlu1 %v241_v1, %s881_s3  ;;  %v228_v35 = vld [vmem:[#allocation2 + $0x3] ss:$4 sm:$0x3]  ;;  %vm277_vm6 = vcmp.lt.s32.totalorder %v1074_v8, 16  ;;  %vm286_vm9 = vcmp.lt.s32.totalorder %v1074_v8, 112  ;;  %s1317_s24 = scalar_lea.hbm %s1371_s2, %s652_s8  ;;  %s791_s29 = scalar_lea.vmem %s1319_s15, 768 }
  0x5f   : > { %245 = vrot.lane.b32.xlu0 %v241_v1, %s882_s4  ;;  %v208_v9 = vrot.slane %v204_v6, %v195_v4  ;;  %v212_v10 = vrot.slane %v204_v6, %v199_v5  ;;  %v196_v11 = vrot.slane %v192_v7, %v195_v4  ;;  %v200_v12 = vrot.slane %v192_v7, %v199_v5  ;;  %p792_p11 = scmp.ne.s32.totalorder %s1319_s15, %s791_s29  ;;  %s885_s12 = smov [#allocation7]  }
  0x60   : > { %v220_v37 = vrot.slane %v216_v34, %v195_v4  ;;  %v224_v38 = vrot.slane %v216_v34, %v199_v5  ;;  %v232_v39 = vrot.slane %v228_v35, %v195_v4  ;;  %v236_v40 = vrot.slane %v228_v35, %v199_v5  ;;  %s795_s30 = sshll.u32 %s885_s12, 4  ;;  %s796_s30 = int_to_ptr.vmem [resolvable:$false] %s795_s30 }
  0x61   : > { %vm1078_vm2 = vcmp.ne.s32.totalorder %v208_v9, 0  ;;  %vm1082_vm3 = vcmp.ne.s32.totalorder %v212_v10, 0  ;;  %vm1086_vm4 = vcmp.ne.s32.totalorder %v196_v11, 0  ;;  %vm1090_vm5 = vcmp.ne.s32.totalorder %v200_v12, 0  ;;  %p793_p6 = pnand %p792_p11, %p1004_p13  ;;  %s797_s6 = scalar_lea.vmem %s796_s30, 1536 }
  0x62   : > { %vm1115_vm7 = vcmp.ne.s32.totalorder %v220_v37, 0  ;;  %vm1119_vm8 = vcmp.ne.s32.totalorder %v224_v38, 0  ;;  %vm1128_vm10 = vcmp.ne.s32.totalorder %v232_v39, 0  ;;  %vm1132_vm11 = vcmp.ne.s32.totalorder %v236_v40, 0  ;;  %p798_p9 = scmp.lt.s32.totalorder %s1319_s15, %s796_s30  ;;  %p799_p12 = scmp.lt.s32.totalorder %s797_s6, %s791_s29 }
  0x63   : > { %p794_p8 = pneg %p793_p6 }
  0x64   : > { %p800_p0 = por %p799_p12, %p798_p9 }
  0x66   : > { %p801_p5 = pnand %p800_p0, %p794_p8 }
  0xcc   : > { %v255_v13 = vpop.permute.xlu1 %254 }
  0xcd   : > { %v244_v14 = vpop.permute.xlu0 %243 }
  0xd0   : > { %v257_v19 = vpop.permute.xlu1 %256 }
  0xd1   : > { %v246_v20 = vpop.permute.xlu0 %245  ;;  %v259_v21 = vsel %vm258_vm0, %v255_v13, %v257_v19  ;;  %v260_v22 = vsel %vm258_vm0, %v257_v19, %v255_v13 }
  0xd2   : > { %v250_v23 = vsel %vm249_vm1, %v244_v14, %v246_v20  ;;  %v251_v24 = vsel %vm249_vm1, %v246_v20, %v244_v14  ;;  %v261_v25 = vsel %vm1078_vm2, %v191_v0, %v259_v21  ;;  %v262_v26 = vsel %vm1082_vm3, %v241_v1, %v260_v22 }
  0xd3   : > { %v252_v27 = vsel %vm1086_vm4, %v191_v0, %v251_v24  ;;  %v253_v28 = vsel %vm1090_vm5, %v241_v1, %v250_v23 }
  0xd4   : > { %v263_v29 = vmax.f32 %v252_v27, %v261_v25  ;;  %v264_v30 = vmax.f32 %v253_v28, %v262_v26 }
  0xd6   : > { %v267_v31 = vcombine.low %v263_v29, %v264_v30 }
  0xd8   : > { %v269_v32 = vmax.f32 %v191_v0, %v267_v31 }
  0xda   : > { %273 = vrot.lane.b32.xlu0 %v269_v32, %s883_s19  ;;  %v271_v33 = vcombine.high %v269_v32, %v269_v32 }
  0xdc   : > { %275 = vrot.lane.b32.xlu1 %v271_v33, %s883_s19 }
  0xde   : > { %282 = vrot.lane.b32.xlu0 %v269_v32, %s884_s26 }
  0xe0   : > { %284 = vrot.lane.b32.xlu1 %v271_v33, %s884_s26 }
 0x14c   : > { %v274_v36 = vpop.permute.xlu0 %273 }
 0x14e   : > { %v276_v41 = vpop.permute.xlu1 %275 }
 0x14f   : > { %v278_v44 = vsel %vm277_vm6, %v274_v36, %v276_v41  ;;  %v279_v45 = vsel %vm277_vm6, %v276_v41, %v274_v36 }
 0x150   : > { %v283_v48 = vpop.permute.xlu0 %282  ;;  %v280_v52 = vsel %vm1115_vm7, %v269_v32, %v279_v45  ;;  %v281_v53 = vsel %vm1119_vm8, %v271_v33, %v278_v44 }
 0x152   : > { %v285_v49 = vpop.permute.xlu1 %284 }
 0x153   : > { %v287_v50 = vsel %vm286_vm9, %v283_v48, %v285_v49  ;;  %v288_v51 = vsel %vm286_vm9, %v285_v49, %v283_v48 }
 0x154   : > { %v289_v54 = vsel %vm1128_vm10, %v269_v32, %v287_v50  ;;  %v290_v55 = vsel %vm1132_vm11, %v271_v33, %v288_v51 }
 0x155   : > { %v291_v56 = vmax.f32 %v280_v52, %v289_v54  ;;  %v292_v57 = vmax.f32 %v281_v53, %v290_v55 }
 0x157   : > { %v295_v58 = vcombine.low %v291_v56, %v292_v57 }
 0x159   : > { %v297_v59 = vmax.f32 %v269_v32, %v295_v58 }
 0x15b   : > { %642 = vst [vmem:[%s1068_s17 + $0x8] sm:$0xff] %v297_v59  ;;  %303 = vrot.lane.b32.xlu0 %v297_v59, %s882_s4  ;;  %v301_v60 = vcombine.high %v297_v59, %v297_v59 }
 0x15d   : > { %305 = vrot.lane.b32.xlu1 %v301_v60, %s882_s4 }
 0x15f   : > { %311 = vrot.lane.b32.xlu0 %v297_v59, %s881_s3 }
 0x161   : > { %313 = vrot.lane.b32.xlu1 %v301_v60, %s881_s3 }
 0x1cd   : > { %v304_v61 = vpop.permute.xlu0 %303 }
 0x1cf   : > { %v306_v62 = vpop.permute.xlu1 %305 }
 0x1d0   : > { %v307_v63 = vsel %vm249_vm1, %v304_v61, %v306_v62  ;;  %v308_v0 = vsel %vm249_vm1, %v306_v62, %v304_v61 }
 0x1d1   : > { %v312_v1 = vpop.permute.xlu0 %311  ;;  %v309_v5 = vsel %vm1086_vm4, %v297_v59, %v308_v0  ;;  %v310_v6 = vsel %vm1090_vm5, %v301_v60, %v307_v63 }
 0x1d3   : > { %v314_v2 = vpop.permute.xlu1 %313 }
 0x1d4   : > { %v315_v3 = vsel %vm258_vm0, %v312_v1, %v314_v2  ;;  %v316_v4 = vsel %vm258_vm0, %v314_v2, %v312_v1 }
 0x1d5   : > { %v317_v7 = vsel %vm1078_vm2, %v297_v59, %v315_v3  ;;  %v318_v9 = vsel %vm1082_vm3, %v301_v60, %v316_v4 }
 0x1d6   : > { %v319_v10 = vmax.f32 %v309_v5, %v317_v7  ;;  %v320_v11 = vmax.f32 %v310_v6, %v318_v9 }
 0x1d8   : > { %v323_v12 = vcombine.low %v319_v10, %v320_v11 }
 0x1da   : > { %v325_v13 = vmax.f32 %v297_v59, %v323_v12 }
 0x1dc   : > { %329 = vrot.lane.b32.xlu0 %v325_v13, %s883_s19  ;;  %v327_v14 = vcombine.high %v325_v13, %v325_v13 }
 0x1de   : > { %331 = vrot.lane.b32.xlu1 %v327_v14, %s883_s19 }
 0x1e0   : > { %337 = vrot.lane.b32.xlu0 %v325_v13, %s884_s26 }
 0x1e2   : > { %339 = vrot.lane.b32.xlu1 %v327_v14, %s884_s26 }
 0x24e   : > { %v330_v19 = vpop.permute.xlu0 %329 }
 0x250   : > { %v332_v20 = vpop.permute.xlu1 %331 }
 0x251   : > { %v333_v21 = vsel %vm277_vm6, %v330_v19, %v332_v20  ;;  %v334_v22 = vsel %vm277_vm6, %v332_v20, %v330_v19 }
 0x252   : > { %v338_v23 = vpop.permute.xlu0 %337  ;;  %v335_v27 = vsel %vm1115_vm7, %v325_v13, %v334_v22  ;;  %v336_v28 = vsel %vm1119_vm8, %v327_v14, %v333_v21 }
 0x254   : > { %v340_v24 = vpop.permute.xlu1 %339 }
 0x255   : > { %v341_v25 = vsel %vm286_vm9, %v338_v23, %v340_v24  ;;  %v342_v26 = vsel %vm286_vm9, %v340_v24, %v338_v23 }
 0x256   : > { %v343_v29 = vsel %vm1128_vm10, %v325_v13, %v341_v25  ;;  %v344_v30 = vsel %vm1132_vm11, %v327_v14, %v342_v26 }
 0x257   : > { %v345_v31 = vmax.f32 %v335_v27, %v343_v29  ;;  %v346_v32 = vmax.f32 %v336_v28, %v344_v30 }
 0x259   : > { %v349_v33 = vcombine.low %v345_v31, %v346_v32 }
 0x25b   : > { %v351_v34 = vmax.f32 %v325_v13, %v349_v33 }
 0x25d   : > { %643 = vst [vmem:[%s1068_s17 + $0x10] sm:$0xff] %v351_v34  ;;  %357 = vrot.lane.b32.xlu0 %v351_v34, %s882_s4  ;;  %v355_v35 = vcombine.high %v351_v34, %v351_v34 }
 0x25f   : > { %359 = vrot.lane.b32.xlu1 %v355_v35, %s882_s4 }
 0x261   : > { %365 = vrot.lane.b32.xlu0 %v351_v34, %s881_s3 }
 0x263   : > { %367 = vrot.lane.b32.xlu1 %v355_v35, %s881_s3 }
 0x2cf   : > { %v358_v36 = vpop.permute.xlu0 %357 }
 0x2d1   : > { %v360_v37 = vpop.permute.xlu1 %359 }
 0x2d2   : > { %v361_v38 = vsel %vm249_vm1, %v358_v36, %v360_v37  ;;  %v362_v39 = vsel %vm249_vm1, %v360_v37, %v358_v36 }
 0x2d3   : > { %v366_v40 = vpop.permute.xlu0 %365  ;;  %v363_v48 = vsel %vm1086_vm4, %v351_v34, %v362_v39  ;;  %v364_v49 = vsel %vm1090_vm5, %v355_v35, %v361_v38 }
 0x2d5   : > { %v368_v41 = vpop.permute.xlu1 %367 }
 0x2d6   : > { %v369_v44 = vsel %vm258_vm0, %v366_v40, %v368_v41  ;;  %v370_v45 = vsel %vm258_vm0, %v368_v41, %v366_v40 }
 0x2d7   : > { %v371_v50 = vsel %vm1078_vm2, %v351_v34, %v369_v44  ;;  %v372_v51 = vsel %vm1082_vm3, %v355_v35, %v370_v45 }
 0x2d8   : > { %v373_v52 = vmax.f32 %v363_v48, %v371_v50  ;;  %v374_v53 = vmax.f32 %v364_v49, %v372_v51 }
 0x2da   : > { %v377_v54 = vcombine.low %v373_v52, %v374_v53 }
 0x2dc   : > { %v379_v55 = vmax.f32 %v351_v34, %v377_v54 }
 0x2de   : > { %383 = vrot.lane.b32.xlu0 %v379_v55, %s883_s19  ;;  %v381_v56 = vcombine.high %v379_v55, %v379_v55 }
 0x2e0   : > { %385 = vrot.lane.b32.xlu1 %v381_v56, %s883_s19 }
 0x2e2   : > { %391 = vrot.lane.b32.xlu0 %v379_v55, %s884_s26 }
 0x2e4   : > { %393 = vrot.lane.b32.xlu1 %v381_v56, %s884_s26 }
 0x350   : > { %v384_v57 = vpop.permute.xlu0 %383 }
 0x352   : > { %v386_v58 = vpop.permute.xlu1 %385 }
 0x353   : > { %v387_v59 = vsel %vm277_vm6, %v384_v57, %v386_v58  ;;  %v388_v60 = vsel %vm277_vm6, %v386_v58, %v384_v57 }
 0x354   : > { %v392_v61 = vpop.permute.xlu0 %391  ;;  %v389_v1 = vsel %vm1115_vm7, %v379_v55, %v388_v60  ;;  %v390_v2 = vsel %vm1119_vm8, %v381_v56, %v387_v59 }
 0x356   : > { %v394_v62 = vpop.permute.xlu1 %393 }
 0x357   : > { %v395_v63 = vsel %vm286_vm9, %v392_v61, %v394_v62  ;;  %v396_v0 = vsel %vm286_vm9, %v394_v62, %v392_v61 }
 0x358   : > { %v397_v3 = vsel %vm1128_vm10, %v379_v55, %v395_v63  ;;  %v398_v4 = vsel %vm1132_vm11, %v381_v56, %v396_v0 }
 0x359   : > { %v399_v5 = vmax.f32 %v389_v1, %v397_v3  ;;  %v400_v6 = vmax.f32 %v390_v2, %v398_v4 }
 0x35b   : > { %v403_v7 = vcombine.low %v399_v5, %v400_v6 }
 0x35d   : > { %v405_v9 = vmax.f32 %v379_v55, %v403_v7 }
 0x35f   : > { %644 = vst [vmem:[%s1068_s17 + $0x18] sm:$0xff] %v405_v9  ;;  %411 = vrot.lane.b32.xlu0 %v405_v9, %s882_s4  ;;  %v409_v10 = vcombine.high %v405_v9, %v405_v9 }
 0x361   : > { %413 = vrot.lane.b32.xlu1 %v409_v10, %s882_s4 }
 0x363   : > { %419 = vrot.lane.b32.xlu0 %v405_v9, %s881_s3 }
 0x365   : > { %421 = vrot.lane.b32.xlu1 %v409_v10, %s881_s3 }
 0x3d1   : > { %v412_v11 = vpop.permute.xlu0 %411 }
 0x3d3   : > { %v414_v12 = vpop.permute.xlu1 %413 }
 0x3d4   : > { %v415_v13 = vsel %vm249_vm1, %v412_v11, %v414_v12  ;;  %v416_v14 = vsel %vm249_vm1, %v414_v12, %v412_v11 }
 0x3d5   : > { %v420_v19 = vpop.permute.xlu0 %419  ;;  %v417_v23 = vsel %vm1086_vm4, %v405_v9, %v416_v14  ;;  %v418_v24 = vsel %vm1090_vm5, %v409_v10, %v415_v13 }
 0x3d7   : > { %v422_v20 = vpop.permute.xlu1 %421 }
 0x3d8   : > { %v423_v21 = vsel %vm258_vm0, %v420_v19, %v422_v20  ;;  %v424_v22 = vsel %vm258_vm0, %v422_v20, %v420_v19 }
 0x3d9   : > { %v425_v25 = vsel %vm1078_vm2, %v405_v9, %v423_v21  ;;  %v426_v26 = vsel %vm1082_vm3, %v409_v10, %v424_v22 }
 0x3da   : > { %v427_v27 = vmax.f32 %v417_v23, %v425_v25  ;;  %v428_v28 = vmax.f32 %v418_v24, %v426_v26 }
 0x3dc   : > { %v431_v29 = vcombine.low %v427_v27, %v428_v28 }
 0x3de   : > { %v433_v30 = vmax.f32 %v405_v9, %v431_v29 }
 0x3e0   : > { %437 = vrot.lane.b32.xlu0 %v433_v30, %s883_s19  ;;  %v435_v31 = vcombine.high %v433_v30, %v433_v30 }
 0x3e2   : > { %439 = vrot.lane.b32.xlu1 %v435_v31, %s883_s19 }
 0x3e4   : > { %445 = vrot.lane.b32.xlu0 %v433_v30, %s884_s26 }
 0x3e6   : > { %447 = vrot.lane.b32.xlu1 %v435_v31, %s884_s26 }
 0x452   : > { %v438_v32 = vpop.permute.xlu0 %437 }
 0x454   : > { %v440_v33 = vpop.permute.xlu1 %439 }
 0x455   : > { %v441_v34 = vsel %vm277_vm6, %v438_v32, %v440_v33  ;;  %v442_v35 = vsel %vm277_vm6, %v440_v33, %v438_v32 }
 0x456   : > { %v446_v36 = vpop.permute.xlu0 %445  ;;  %v443_v40 = vsel %vm1115_vm7, %v433_v30, %v442_v35  ;;  %v444_v41 = vsel %vm1119_vm8, %v435_v31, %v441_v34 }
 0x458   : > { %v448_v37 = vpop.permute.xlu1 %447 }
 0x459   : > { %v449_v38 = vsel %vm286_vm9, %v446_v36, %v448_v37  ;;  %v450_v39 = vsel %vm286_vm9, %v448_v37, %v446_v36 }
 0x45a   : > { %v451_v44 = vsel %vm1128_vm10, %v433_v30, %v449_v38  ;;  %v452_v45 = vsel %vm1132_vm11, %v435_v31, %v450_v39 }
 0x45b   : > { %v453_v48 = vmax.f32 %v443_v40, %v451_v44  ;;  %v454_v49 = vmax.f32 %v444_v41, %v452_v45 }
 0x45d   : > { %v457_v50 = vcombine.low %v453_v48, %v454_v49 }
 0x45f   : > { %v459_v51 = vmax.f32 %v433_v30, %v457_v50 }
 0x461   : > { %645 = vst [vmem:[%s1068_s17 + $0x20] sm:$0xff] %v459_v51  ;;  %465 = vrot.lane.b32.xlu0 %v459_v51, %s882_s4  ;;  %v463_v52 = vcombine.high %v459_v51, %v459_v51 }
 0x463   : > { %467 = vrot.lane.b32.xlu1 %v463_v52, %s882_s4 }
 0x465   : > { %473 = vrot.lane.b32.xlu0 %v459_v51, %s881_s3 }
 0x467   : > { %475 = vrot.lane.b32.xlu1 %v463_v52, %s881_s3 }
 0x4d3   : > { %v466_v53 = vpop.permute.xlu0 %465 }
 0x4d5   : > { %v468_v54 = vpop.permute.xlu1 %467 }
 0x4d6   : > { %v469_v55 = vsel %vm249_vm1, %v466_v53, %v468_v54  ;;  %v470_v56 = vsel %vm249_vm1, %v468_v54, %v466_v53 }
 0x4d7   : > { %v474_v57 = vpop.permute.xlu0 %473  ;;  %v471_v61 = vsel %vm1086_vm4, %v459_v51, %v470_v56  ;;  %v472_v62 = vsel %vm1090_vm5, %v463_v52, %v469_v55 }
 0x4d9   : > { %v476_v58 = vpop.permute.xlu1 %475 }
 0x4da   : > { %v477_v59 = vsel %vm258_vm0, %v474_v57, %v476_v58  ;;  %v478_v60 = vsel %vm258_vm0, %v476_v58, %v474_v57 }
 0x4db   : > { %v479_v63 = vsel %vm1078_vm2, %v459_v51, %v477_v59  ;;  %v480_v0 = vsel %vm1082_vm3, %v463_v52, %v478_v60 }
 0x4dc   : > { %v481_v1 = vmax.f32 %v471_v61, %v479_v63  ;;  %v482_v2 = vmax.f32 %v472_v62, %v480_v0 }
 0x4de   : > { %v485_v3 = vcombine.low %v481_v1, %v482_v2 }
 0x4e0   : > { %v487_v4 = vmax.f32 %v459_v51, %v485_v3 }
 0x4e2   : > { %491 = vrot.lane.b32.xlu0 %v487_v4, %s883_s19  ;;  %v489_v5 = vcombine.high %v487_v4, %v487_v4 }
 0x4e4   : > { %493 = vrot.lane.b32.xlu1 %v489_v5, %s883_s19 }
 0x4e6   : > { %499 = vrot.lane.b32.xlu0 %v487_v4, %s884_s26 }
 0x4e8   : > { %501 = vrot.lane.b32.xlu1 %v489_v5, %s884_s26 }
 0x554   : > { %v492_v15 = vpop.permute.xlu0 %491 }
 0x556   : > { %v494_v17 = vpop.permute.xlu1 %493 }
 0x557   : > { %v495_v16 = vsel %vm277_vm6, %v492_v15, %v494_v17  ;;  %v496_v18 = vsel %vm277_vm6, %v494_v17, %v492_v15 }
 0x558   : > { %v500_v6 = vpop.permute.xlu0 %499  ;;  %v497_v11 = vsel %vm1115_vm7, %v487_v4, %v496_v18  ;;  %v498_v12 = vsel %vm1119_vm8, %v489_v5, %v495_v16 }
 0x55a   : > { %v502_v7 = vpop.permute.xlu1 %501 }
 0x55b   : > { %v503_v9 = vsel %vm286_vm9, %v500_v6, %v502_v7  ;;  %v504_v10 = vsel %vm286_vm9, %v502_v7, %v500_v6 }
 0x55c   : > { %v505_v13 = vsel %vm1128_vm10, %v487_v4, %v503_v9  ;;  %v506_v14 = vsel %vm1132_vm11, %v489_v5, %v504_v10 }
 0x55d   : > { %v507_v19 = vmax.f32 %v497_v11, %v505_v13  ;;  %v508_v20 = vmax.f32 %v498_v12, %v506_v14 }
 0x55f   : > { %v511_v21 = vcombine.low %v507_v19, %v508_v20 }
 0x561   : > { %v513_v8 = vmax.f32 %v487_v4, %v511_v21 }
 0x563   : > { %646 = vst [vmem:[%s1068_s17 + $0x28] sm:$0xff] %v513_v8 }
 0x564   : > { %804 = shalt.err (!%p801_p5)
}
 0x565   : > { %s805_s5 = scalar_lea.hbm %s1317_s24, 768  ;;  %s809_s3 = scalar_lea.hbm %s1371_s2, 1536 }
 0x566   : > { %p806_p10 = scmp.ne.s32.totalorder %s1317_s24, %s805_s5  ;;  %p810_p7 = scmp.lt.u32.totalorder %s1317_s24, %s1371_s2 }
 0x567   : > { %p811_p3 = scmp.lt.u32.totalorder %s809_s3, %s805_s5  ;;  %p813_p11 = scmp.lt.u32.totalorder %s805_s5, %s1317_s24 }
 0x568   : > { %p807_p1 = pnand %p806_p10, %p1004_p13 }
 0x569   : > { %p812_p4 = por %p811_p3, %p810_p7 }
 0x56a   : > { %p808_p2 = pneg %p807_p1 }
 0x56b   : > { %p814_p6 = por %p813_p11, %p812_p4 }
 0x56d   : > { %p815_p8 = pnand %p814_p6, %p808_p2 }
 0x56f   : > { %818 = shalt.err (!%p815_p8)
}
 0x570   : > { %s886_s19 = smov 128   ;;  %s887_s26 = smov 8  }
 0x571   : > { %659 = dma.vmem_to_hbm [thread:$0]  (%p1004_p13), %s1319_s15, 768, %s1317_s24, %s517_s27, %s886_s19, %s886_s19, %s887_s26  }
 0x572 PF: > { %s547_s8 = sand.u32 1, %s857_s9   ;;  %p1406_p9 = scmp.ne.s32.totalorder %s1379_s20, 0 }
 0x573   : > { %p1407_p12 = scmp.ge.s32.totalorder %s877_s14, 2  ;;  %s548_s16 = scalar_lea.sflag [#allocation4], %s547_s8 }
 0x575   : > { %p670_p0 = pnand %p1407_p12, %p1406_p9 }
 0x577   : > { %852 = dma.done.wait (!%p670_p0), %s548_s16, 768  }
 0x578   : > { %854 = vsyncadd (!%p670_p0), %s548_s16, 4294966528  ;;  %s19_s14 = sadd.s32 1, %s877_s14   ;;  %s1408_s9 = smov %s861_s10 }
 0x579   : > { %p16_p5 = scmp.ge.s32.totalorder %s19_s14, 4   ;;  %s1409_s10 = smov %s865_s11 }
 0x57a   : > { %s1410_s11 = smov %s1012_s28  ;;  %s1411_s12 = smov %s873_s13 }
 0x57b   : > { %s1412_s13 = smov %s1414_s25  ;;  %18 = sbr.rel (!%p16_p5) target bundleno = 7 (0x7), region = 86 }
 0x582   :  { %553 = vsyncpa [#allocation3], 1 }
 0x583   :  { %555 = vsyncpa [#allocation3 + $0x1], 1 }
 0x584   :  { %556 = vsyncpa [#allocation6], 1 }
 0x585   :  { %558 = vsyncpa [#allocation6 + $0x1], 1 }
 0x586   :  { %559 = vsyncpa [#allocation4], 1 }
 0x587   :  { %561 = vsyncpa [#allocation4 + $0x1], 1 }

</bundles_post_ra>
